<compile_context>
chip_gen: v5e
topology: v5e:2x2
jax: 0.10.0
libtpu: 0.0.40
codegen_flags: <defaults>
</compile_context>

<pallas_src>
import jax
import jax.numpy as jnp
from jax.experimental import pallas as pl
from jax.experimental.pallas import tpu as pltpu


def _round_up(v, m):
    return (v + m - 1) // m * m


def _cnnres_kernel(x_ref, wf_ref, bf_ref, w2_ref, b2_ref, o_ref):
    """Fused (conv∘fc1) matmul -> ReLU -> fc2 over one row tile.

    x_ref : (TR, K*Cin)   bf16 im2col rows (B*L flattened, row-padded)
    wf_ref: (K*Cin, Hpad) bf16 folded conv+fc1 weight
    bf_ref: (1, Hpad)     f32  folded conv+fc1 bias
    w2_ref: (Hpad, Npad)  bf16 fc2 weight (lane-padded)
    b2_ref: (1, Npad)     f32  fc2 bias (lane-padded)
    o_ref : (TR, Npad)    f32  lane-dense output tile
    """
    h = jnp.dot(x_ref[...], wf_ref[...], preferred_element_type=jnp.float32)
    h = jnp.maximum(h + bf_ref[...], 0.0)
    out = jnp.dot(h.astype(w2_ref.dtype), w2_ref[...],
                  preferred_element_type=jnp.float32)
    o_ref[...] = (out + b2_ref[...]).astype(o_ref.dtype)


def cnnres_forward(x, params, *, kernel_size):
    """x: (B, L, Cin) float32 -> (B, L_out, n_classes) float32 (eval mode)."""
    B, L, Cin = x.shape
    K = kernel_size
    wconv = params["wconv"]                 # (K, Cin, Cout)
    bconv = params["bconv"]                 # (1, Cout)
    w1, b1 = params["w1"], params["b1"]     # (Cout, 2*Cout), (1, 2*Cout)
    w2, b2 = params["w2"], params["b2"]     # (2*Cout, n_classes), (1, n_classes)
    Cout = wconv.shape[-1]
    H = w1.shape[-1]
    n_classes = w2.shape[-1]

    # Conv1d padding exactly as the torch module: pad=(K-1)//2 on both sides.
    pad = (K - 1) // 2
    L_out = L + 2 * pad - (K - 1)           # == L for odd K (the torch default use)
    xpad = jnp.pad(x, ((0, 0), (pad, pad), (0, 0)))

    # im2col in the wrapper: (B, L_out, K*Cin) -> (B*L_out, K*Cin) rows.
    xcol = jnp.concatenate([xpad[:, k:k + L_out, :] for k in range(K)], axis=-1)
    R = B * L_out
    xcol = xcol.reshape(R, K * Cin)

    # Fold conv into fc1 (dropout is identity in eval mode).
    # TODO(synk): training-mode dropout (stateful PRNG mask between conv and
    # fc1) is not implemented; this kernel is the eval-mode forward.
    w_fold = wconv.reshape(K * Cin, Cout) @ w1          # (K*Cin, H)
    b_fold = bconv @ w1 + b1                            # (1, H)

    # Lane-pad hidden and class dims to multiples of 128 (lane-dense stores).
    Hpad = _round_up(H, 128)
    Npad = _round_up(n_classes, 128)
    w_fold = jnp.pad(w_fold, ((0, 0), (0, Hpad - H)))
    b_fold = jnp.pad(b_fold, ((0, 0), (0, Hpad - H)))
    w2p = jnp.pad(w2, ((0, Hpad - H), (0, Npad - n_classes)))
    b2p = jnp.pad(b2, ((0, 0), (0, Npad - n_classes)))

    # Row tiling over the fused B*L dimension.
    TILE_R = 256 if R >= 256 else _round_up(R, 16)
    R_pad = _round_up(R, TILE_R)
    xcol = jnp.pad(xcol, ((0, R_pad - R), (0, 0)))

    # bf16 matmul inputs; accumulation / bias / ReLU stay f32.
    xcol = xcol.astype(jnp.bfloat16)
    w_fold = w_fold.astype(jnp.bfloat16)
    w2p = w2p.astype(jnp.bfloat16)

    KC = K * Cin
    out = pl.pallas_call(
        _cnnres_kernel,
        out_shape=jax.ShapeDtypeStruct((R_pad, Npad), jnp.float32),
        grid_spec=pltpu.PrefetchScalarGridSpec(
            num_scalar_prefetch=0,
            grid=(R_pad // TILE_R,),
            in_specs=[
                pl.BlockSpec((TILE_R, KC), lambda i: (i, 0)),
                pl.BlockSpec((KC, Hpad), lambda i: (0, 0)),
                pl.BlockSpec((1, Hpad), lambda i: (0, 0)),
                pl.BlockSpec((Hpad, Npad), lambda i: (0, 0)),
                pl.BlockSpec((1, Npad), lambda i: (0, 0)),
            ],
            out_specs=pl.BlockSpec((TILE_R, Npad), lambda i: (i, 0)),
        ),
        compiler_params=pltpu.CompilerParams(
            dimension_semantics=("parallel",),
            vmem_limit_bytes=32 * 1024 * 1024,
        ),
    )(xcol, w_fold, b_fold, w2p, b2p)

    return out[:R, :n_classes].reshape(B, L_out, n_classes).astype(x.dtype)


def make_params(key, inchannels, outchannels, kernel_size, n_classes):
    """Deterministic synthetic parameters (shapes match the torch module)."""
    k = jax.random.split(key, 6)
    # torch Conv1d weight is (C_out, C_in, K); store as (K, C_in, C_out)
    wconv_t = jax.random.normal(k[0], (outchannels, inchannels, kernel_size),
                                jnp.float32) * 0.1
    wconv = jnp.transpose(wconv_t, (2, 1, 0))
    bconv = jax.random.normal(k[1], (1, outchannels), jnp.float32) * 0.1
    # torch Linear weight is (out, in); store transposed for x @ W
    w1 = jnp.transpose(jax.random.normal(
        k[2], (2 * outchannels, outchannels), jnp.float32) * 0.1)
    b1 = jax.random.normal(k[3], (1, 2 * outchannels), jnp.float32) * 0.1
    w2 = jnp.transpose(jax.random.normal(
        k[4], (n_classes, 2 * outchannels), jnp.float32) * 0.1)
    b2 = jax.random.normal(k[5], (1, n_classes), jnp.float32) * 0.1
    return {"wconv": wconv, "bconv": bconv, "w1": w1, "b1": b1,
            "w2": w2, "b2": b2}


def _reference(x, params, kernel_size):
    """Pure-JAX (f32) reference of the same math."""
    K = kernel_size
    pad = (K - 1) // 2
    xpad = jnp.pad(x, ((0, 0), (pad, pad), (0, 0)))
    L_out = x.shape[1] + 2 * pad - (K - 1)
    conv = jnp.zeros((x.shape[0], L_out, params["wconv"].shape[-1]),
                     jnp.float32) + params["bconv"]
    for k in range(K):
        conv = conv + jnp.einsum("blc,co->blo", xpad[:, k:k + L_out, :],
                                 params["wconv"][k])
    h = jnp.maximum(conv @ params["w1"] + params["b1"], 0.0)
    return h @ params["w2"] + params["b2"]


if __name__ == "__main__":
    # small shapes consistent with the module's forward
    B, L, Cin = 2, 8, 4          # x: (batch, seq, in_channels)
    Cout, K, n_classes, prob = 8, 3, 5, 0.5

    key = jax.random.PRNGKey(0)
    kx, kp = jax.random.split(key)
    x = jax.random.normal(kx, (B, L, Cin), jnp.float32)
    params = make_params(kp, Cin, Cout, K, n_classes)

    out = cnnres_forward(x, params, kernel_size=K)
    out = jax.block_until_ready(out)

    ref = _reference(x, params, K)
    assert out.shape == (B, L, n_classes)
    # bf16 matmul inputs -> looser tolerance vs the f32 reference
    assert jnp.allclose(out, ref, atol=3e-2, rtol=3e-2)

    print("KERNEL_OK")
</pallas_src>

<mosaic_0001>
module attributes {stable_mosaic.version = 11 : i64} {
  func.func @_cnnres_kernel(%arg0: i32, %arg1: memref<16x12xbf16, #tpu.memory_space<vmem>>, %arg2: memref<12x128xbf16, #tpu.memory_space<vmem>>, %arg3: memref<1x128xf32, #tpu.memory_space<vmem>>, %arg4: memref<128x128xbf16, #tpu.memory_space<vmem>>, %arg5: memref<1x128xf32, #tpu.memory_space<vmem>>, %arg6: memref<16x128xf32, #tpu.memory_space<vmem>>) attributes {dimension_semantics = [#tpu.dimension_semantics<parallel>], iteration_bounds = array<i64: 1>, scalar_prefetch = 0 : i64, scratch_operands = 0 : i64, tpu.core_type = #tpu.core_type<tc>, window_params = [{transform_indices = @transform_0, window_bounds = array<i64: 16, 12>}, {pipeline_mode = #tpu.pipeline_mode<synchronous>, transform_indices = @transform_1, window_bounds = array<i64: 12, 128>}, {pipeline_mode = #tpu.pipeline_mode<synchronous>, transform_indices = @transform_2, window_bounds = array<i64: 1, 128>}, {pipeline_mode = #tpu.pipeline_mode<synchronous>, transform_indices = @transform_3, window_bounds = array<i64: 128, 128>}, {pipeline_mode = #tpu.pipeline_mode<synchronous>, transform_indices = @transform_4, window_bounds = array<i64: 1, 128>}, {transform_indices = @transform_5, window_bounds = array<i64: 16, 128>}]} {
    %c0 = arith.constant 0 : index
    %c0_0 = arith.constant 0 : index
    %0 = vector.load %arg1[%c0, %c0_0] : memref<16x12xbf16, #tpu.memory_space<vmem>>, vector<16x12xbf16>
    %c0_1 = arith.constant 0 : index
    %c0_2 = arith.constant 0 : index
    %1 = vector.load %arg2[%c0_1, %c0_2] : memref<12x128xbf16, #tpu.memory_space<vmem>>, vector<12x128xbf16>
    %cst = arith.constant dense<0.000000e+00> : vector<16x128xf32>
    %2 = tpu.matmul %0, %1, %cst {dimension_numbers = #tpu.dot_dimension_numbers<[1], [0], [0], [1], [0, 0, 1, 1], [], []>} : vector<16x12xbf16>, vector<12x128xbf16>, vector<16x128xf32> -> vector<16x128xf32>
    %c0_3 = arith.constant 0 : index
    %c0_4 = arith.constant 0 : index
    %3 = vector.load %arg3[%c0_3, %c0_4] : memref<1x128xf32, #tpu.memory_space<vmem>>, vector<1x128xf32>
    %4 = vector.broadcast %3 : vector<1x128xf32> to vector<16x128xf32>
    %5 = arith.addf %2, %4 : vector<16x128xf32>
    %cst_5 = arith.constant 0.000000e+00 : f32
    %6 = vector.broadcast %cst_5 : f32 to vector<16x128xf32>
    %7 = arith.maximumf %5, %6 : vector<16x128xf32>
    %8 = arith.truncf %7 : vector<16x128xf32> to vector<16x128xbf16>
    %c0_6 = arith.constant 0 : index
    %c0_7 = arith.constant 0 : index
    %9 = vector.load %arg4[%c0_6, %c0_7] : memref<128x128xbf16, #tpu.memory_space<vmem>>, vector<128x128xbf16>
    %cst_8 = arith.constant dense<0.000000e+00> : vector<16x128xf32>
    %10 = tpu.matmul %8, %9, %cst_8 {dimension_numbers = #tpu.dot_dimension_numbers<[1], [0], [0], [1], [0, 0, 1, 1], [], []>} : vector<16x128xbf16>, vector<128x128xbf16>, vector<16x128xf32> -> vector<16x128xf32>
    %c0_9 = arith.constant 0 : index
    %c0_10 = arith.constant 0 : index
    %11 = vector.load %arg5[%c0_9, %c0_10] : memref<1x128xf32, #tpu.memory_space<vmem>>, vector<1x128xf32>
    %12 = vector.broadcast %11 : vector<1x128xf32> to vector<16x128xf32>
    %13 = arith.addf %10, %12 : vector<16x128xf32>
    %c0_11 = arith.constant 0 : index
    %c0_12 = arith.constant 0 : index
    %14 = vector.load %arg6[%c0_11, %c0_12] : memref<16x128xf32, #tpu.memory_space<vmem>>, vector<16x128xf32>
    tpu.vector_store %arg6[%c0_11, %c0_12], %13 {strides = array<i32>} : memref<16x128xf32, #tpu.memory_space<vmem>>, vector<16x128xf32>,
    return
  }
  func.func @transform_0(%arg0: i32) -> (i32, i32) {
    %c0_i32 = arith.constant 0 : i32
    %c0_i32_0 = arith.constant 0 : i32
    return %arg0, %c0_i32 : i32, i32
  }
  func.func @transform_1(%arg0: i32) -> (i32, i32) {
    %c0_i32 = arith.constant 0 : i32
    %c0_i32_0 = arith.constant 0 : i32
    %c0_i32_1 = arith.constant 0 : i32
    return %c0_i32, %c0_i32_0 : i32, i32
  }
  func.func @transform_2(%arg0: i32) -> (i32, i32) {
    %c0_i32 = arith.constant 0 : i32
    %c0_i32_0 = arith.constant 0 : i32
    %c0_i32_1 = arith.constant 0 : i32
    return %c0_i32, %c0_i32_0 : i32, i32
  }
  func.func @transform_3(%arg0: i32) -> (i32, i32) {
    %c0_i32 = arith.constant 0 : i32
    %c0_i32_0 = arith.constant 0 : i32
    %c0_i32_1 = arith.constant 0 : i32
    return %c0_i32, %c0_i32_0 : i32, i32
  }
  func.func @transform_4(%arg0: i32) -> (i32, i32) {
    %c0_i32 = arith.constant 0 : i32
    %c0_i32_0 = arith.constant 0 : i32
    %c0_i32_1 = arith.constant 0 : i32
    return %c0_i32, %c0_i32_0 : i32, i32
  }
  func.func @transform_5(%arg0: i32) -> (i32, i32) {
    %c0_i32 = arith.constant 0 : i32
    %c0_i32_0 = arith.constant 0 : i32
    return %arg0, %c0_i32 : i32, i32
  }
}

</mosaic_0001>

<bundles_post_ra>
// kernel: tpu_custom_call.1
= control target key start
LH: loop header
LB: loop body
LE: loop exit
PB: predicated region body
PF: predicated region fallthrough
CT: control target
= control target key end

     0   :  { %10 = vsyncpa [#allocation3], 0  ;;  %s435_s0 = inlined_call_operand.hbm [shape: bf16[16,12], index: 0, kind: input, shape index: {}]   ;;  %s436_s1 = inlined_call_operand.hbm [shape: bf16[12,128], index: 1, kind: input, shape index: {}]   ;;  %s437_s2 = inlined_call_operand.vmem [shape: f32[1,128], index: 2, kind: input, shape index: {}]   ;;  %s438_s3 = inlined_call_operand.hbm [shape: bf16[128,128], index: 3, kind: input, shape index: {}]   ;;  %s439_s4 = inlined_call_operand.vmem [shape: f32[1,128], index: 4, kind: input, shape index: {}]   ;;  %s440_s5 = inlined_call_operand.hbm [shape: f32[16,128], index: 5, kind: output, shape index: {}]  }
   0x1   :  { %11 = vsyncpa [#allocation6], 0 }
   0x2   :  { %12 = vsyncpa [#allocation4], 0  ;;  %s30_s20 = sshll.u32 %s436_s1, 4  ;;  %s379_s21 = smov [#allocation5]   ;;  %s31_s20 = int_to_ptr.hbm [resolvable:$true] %s30_s20 }
   0x3   :  { %s32_s22 = sshll.u32 %s379_s21, 4  ;;  %s17_s25 = sshll.u32 %s435_s0, 4  ;;  %s33_s22 = int_to_ptr.vmem [resolvable:$true] %s32_s22  ;;  %s18_s25 = int_to_ptr.hbm [resolvable:$true] %s17_s25 }
   0x4   :  { %s380_s26 = smov 64   ;;  %s381_s27 = smov 4  }
   0x5   :  { %38 = dma.hbm_to_vmem [thread:$0]  %s31_s20, 128, %s33_s22, [#allocation6], %s380_s26, %s380_s26, %s381_s27  }
   0x6   :  { %s382_s28 = smov [#allocation2]   ;;  %s45_s7 = sshll.u32 %s438_s3, 4  ;;  %s46_s7 = int_to_ptr.hbm [resolvable:$true] %s45_s7 }
   0x7   :  { %s19_s29 = sshll.u32 %s382_s28, 4  ;;  %s383_s1 = smov [#allocation7]   ;;  %s20_s29 = int_to_ptr.vmem [resolvable:$true] %s19_s29 }
   0x8   :  { %25 = dma.hbm_to_vmem [thread:$0]  %s18_s25, 128, %s20_s29, [#allocation3], %s380_s26, %s380_s26, %s381_s27  }
   0x9   :  { %s47_s8 = sshll.u32 %s383_s1, 4  ;;  %s48_s8 = int_to_ptr.vmem [resolvable:$true] %s47_s8 }
   0xa   :  { %53 = dma.hbm_to_vmem [thread:$0]  %s46_s7, 1024, %s48_s8, [#allocation6], %s380_s26, %s380_s26, %s381_s27  }
   0xb   :  { %373 = dma.done.wait [#allocation3], 128  }
   0xc   :  { %374 = vsyncadd [#allocation3], 4294967168 }
   0xd   :  { %375 = dma.done.wait [#allocation6], 1152  }
   0xe   :  { %376 = vsyncadd [#allocation6], 4294966144  ;;  %v222_v0 = vld [vmem:[#allocation5] sm:$0xf]  ;;  %v258_v1 = vld [vmem:[#allocation5] sm:$0x30] }
   0xf   :  { %vm91_vm0 = vcmask 1045504   ;;  %v223_v2 = vor.u32 %v258_v1, %v222_v0  ;;  %v266_v3 = vld [vmem:[#allocation7 + $0x38] sm:$0xff]  ;;  %v257_v5 = vld [vmem:[#allocation2] sm:$0xff]  ;;  %vm87_vm1 = vcmask 97280   ;;  %v264_v7 = vld [vmem:[#allocation7 + $0x28] sm:$0xff]  ;;  %s384_s11 = smov [#allocation8]  }
  0x10   :  { %180 = vmatpush.bf16.msra.mxu1 %v266_v3  ;;  %v265_v6 = vld [vmem:[#allocation7 + $0x30] sm:$0xff]  ;;  %v263_v8 = vld [vmem:[#allocation7 + $0x20] sm:$0xff]  ;;  %v262_v9 = vld [vmem:[#allocation7 + $0x18] sm:$0xff]  ;;  %s200_s12 = sshll.u32 %s384_s11, 4  ;;  %s385_s15 = smov 128   ;;  %s201_s12 = int_to_ptr.vmem [resolvable:$true] %s200_s12 }
  0x11   :  { %v93_v4 = vsel %vm91_vm0, %v223_v2, 0  ;;  %v261_v10 = vld [vmem:[#allocation7 + $0x10] sm:$0xff]  ;;  %v260_v11 = vld [vmem:[#allocation7 + $0x8] sm:$0xff]  ;;  %v259_v12 = vld [vmem:[#allocation7] sm:$0xff]  ;;  %s386_s16 = smov 8  }
  0x12   :  { %102 = vmatpush.bf16.msra.mxu0 %v93_v4  ;;  %v275_v14 = vld [vmem:[%s437_s2] ss:$0 sm:$0xff]  ;;  %s202_s2 = sshll.u32 %s440_s5, 4  ;;  %s203_s2 = int_to_ptr.hbm [resolvable:$true] %s202_s2 }
  0x13   :  { %v276_v21 = vld [vmem:[%s439_s4] ss:$0 sm:$0xff] }
  0x14   :  { %181 = vmatpush.bf16.msra.mxu1 %v265_v6 }
  0x15   :  { %224 = vmatmul.msk.bf16.vlgmr.msra.gmra.mxu0 %vm87_vm1, %v257_v5 }
  0x18   :  { %182 = vmatpush.bf16.msra.mxu1 %v264_v7 }
  0x1c   :  { %183 = vmatpush.bf16.msra.mxu1 %v263_v8 }
  0x20   :  { %184 = vmatpush.bf16.msra.mxu1 %v262_v9 }
  0x24   :  { %185 = vmatpush.bf16.msra.mxu1 %v261_v10 }
  0x28   :  { %186 = vmatpush.bf16.msra.mxu1 %v260_v11 }
  0x2c   :  { %187 = vmatpush.bf16.msra.mxu1 %v259_v12 }
  0x92   :  { %v104_v13 = vpop.f32.mrf.mxu0 }
  0x93   :  { %v105_v15 = vadd.f32 %v275_v14, %v104_v13 }
  0x95   :  { %v109_v18 = vmax.f32 %v105_v15, 0.0 }
  0x9a   :  { %v106_v16 = vpop.f32.mrf.mxu0 }
  0x9b   :  { %v107_v17 = vadd.f32 %v275_v14, %v106_v16 }
  0x9d   :  { %v110_v19 = vmax.f32 %v107_v17, 0.0 }
  0x9f   :  { %v111_v20 = vpack.c.bf16 %v110_v19, %v109_v18 }
  0xa1   :  { %188 = vmatmul.bf16.vlgmr.msra.gmra.mxu1 %v111_v20 }
 0x11e   :  { %v189_v22 = vpop.f32.mrf.mxu1 }
 0x11f   :  { %v190_v23 = vadd.f32 %v276_v21, %v189_v22 }
 0x121   :  { %194 = vst [vmem:[#allocation8] sm:$0xff] %v190_v23 }
 0x126   :  { %v191_v24 = vpop.f32.mrf.mxu1 }
 0x127   :  { %v192_v25 = vadd.f32 %v276_v21, %v191_v24 }
 0x129   :  { %195 = vst [vmem:[#allocation8 + $0x8] sm:$0xff] %v192_v25 }
 0x12a   :  { %208 = dma.vmem_to_hbm [thread:$0]  %s201_s12, 256, %s203_s2, [#allocation4], %s385_s15, %s385_s15, %s386_s16  }
 0x12b   :  { %377 = dma.done.wait [#allocation4], 256  }
 0x12c   :  { %378 = vsyncadd [#allocation4], 4294967040 }
 0x12d   :  { %213 = vsyncpa [#allocation3], 1 }
 0x12e   :  { %214 = vsyncpa [#allocation6], 1 }
 0x12f   :  { %215 = vsyncpa [#allocation4], 1 }

</bundles_post_ra>
